<compile_context>
chip_gen: v7x
topology: tpu7x:2x2x1
jax: 0.10.0
libtpu: 0.0.40
codegen_flags: <defaults>
</compile_context>

<pallas_src>
import functools

import jax
import jax.numpy as jnp
from jax import lax
from jax.experimental import pallas as pl
from jax.experimental.pallas import tpu as pltpu

_LANE = 128
_SUBLANE = 8


def _make_linear_kernel(compute_dtype):
    def _linear_kernel(x_ref, w_ref, b_ref, o_ref):
        # x_ref: (tm, K), w_ref: (Np, K) native nn.Linear layout, b_ref: (1, Np), o_ref: (tm, Np)
        x = x_ref[...]
        w = w_ref[...]
        if compute_dtype is not None:
            x = x.astype(compute_dtype)
            w = w.astype(compute_dtype)
        # Contract on K (last dim of both) -> (tm, Np); f32 accumulate on the MXU.
        acc = lax.dot_general(
            x, w,
            dimension_numbers=(((1,), (1,)), ((), ())),
            preferred_element_type=jnp.float32,
        )
        o_ref[...] = (acc + b_ref[...]).astype(o_ref.dtype)

    return _linear_kernel


def prepare_deep_head_params(weight, bias):
    """One-time parameter prep (hoisted out of the per-call hot path).

    weight: (N, K) PyTorch nn.Linear layout  -> zero-padded to (Np, K), Np = ceil(N/128)*128
    bias:   (N,)                             -> zero-padded to (1, Np)
    The native (N, K) layout is kept so the kernel's weight tile is lane-dense on K.
    """
    N, K = weight.shape
    Np = pl.cdiv(N, _LANE) * _LANE
    w_p = jnp.zeros((Np, K), weight.dtype).at[:N, :].set(weight)
    b_p = jnp.zeros((1, Np), bias.dtype).at[0, :N].set(bias)
    return w_p, b_p


def deep_head_forward(x, w_p, b_p, *, out_features, block_rows=256, compute_dtype=None):
    """out = x @ weight.T + bias, using pre-padded params from prepare_deep_head_params.

    x:   (B, K) float32
    w_p: (Np, K)  zero-padded native-layout weight
    b_p: (1, Np)  zero-padded bias
    returns (B, out_features)
    """
    B, K = x.shape
    Np, K2 = w_p.shape
    assert K == K2 and b_p.shape == (1, Np)

    kernel = _make_linear_kernel(compute_dtype)

    if B <= block_rows:
        # Small batch: one gridless call, whole operands resident in VMEM.
        out_p = pl.pallas_call(
            kernel,
            out_shape=jax.ShapeDtypeStruct((B, Np), x.dtype),
            in_specs=[
                pl.BlockSpec(memory_space=pltpu.MemorySpace.VMEM),
                pl.BlockSpec(memory_space=pltpu.MemorySpace.VMEM),
                pl.BlockSpec(memory_space=pltpu.MemorySpace.VMEM),
            ],
            out_specs=pl.BlockSpec(memory_space=pltpu.MemorySpace.VMEM),
        )(x, w_p, b_p)
        return out_p[:, :out_features]

    # Large batch: tile rows and mark the axis "parallel" so v7x's 2 TCs share the work.
    tm = block_rows
    B_pad = pl.cdiv(B, tm) * tm
    if B_pad != B:
        x = jnp.pad(x, ((0, B_pad - B), (0, 0)))
    out_p = pl.pallas_call(
        kernel,
        out_shape=jax.ShapeDtypeStruct((B_pad, Np), x.dtype),
        grid=(B_pad // tm,),
        in_specs=[
            pl.BlockSpec((tm, K), lambda i: (i, 0)),
            pl.BlockSpec((Np, K), lambda i: (0, 0)),
            pl.BlockSpec((1, Np), lambda i: (0, 0)),
        ],
        out_specs=pl.BlockSpec((tm, Np), lambda i: (i, 0)),
        compiler_params=pltpu.CompilerParams(
            dimension_semantics=("parallel",),
            vmem_limit_bytes=48 * 1024 * 1024,  # fits v7x's 64 MiB VMEM with headroom
        ),
    )(x, w_p, b_p)
    return out_p[:B, :out_features]


def reference_forward(x, weight, bias):
    return x @ weight.T + bias[None, :]


if __name__ == "__main__":
    input_dim, output_dim = 768, 20
    batch = 8

    key = jax.random.PRNGKey(0)
    kx, kw, kb = jax.random.split(key, 3)

    # Deterministic init mimicking nn.Linear default: U(-1/sqrt(in), 1/sqrt(in))
    bound = 1.0 / (input_dim ** 0.5)
    weight = jax.random.uniform(kw, (output_dim, input_dim), jnp.float32,
                                minval=-bound, maxval=bound)
    bias = jax.random.uniform(kb, (output_dim,), jnp.float32,
                              minval=-bound, maxval=bound)
    x = jax.random.normal(kx, (batch, input_dim), jnp.float32)

    # One-time param prep (hoisted out of the per-call path).
    w_p, b_p = prepare_deep_head_params(weight, bias)
    w_p, b_p = jax.block_until_ready((w_p, b_p))

    fwd = jax.jit(
        functools.partial(deep_head_forward, out_features=output_dim),
        static_argnames=("block_rows", "compute_dtype"),
    )
    out = fwd(x, w_p, b_p)  # default compute_dtype=None -> f32 MXU, matches PyTorch numerics
    out = jax.block_until_ready(out)

    ref = reference_forward(x, weight, bias)
    assert out.shape == (batch, output_dim)
    assert jnp.allclose(out, ref, atol=1e-4, rtol=1e-4), "mismatch vs reference"

    print("KERNEL_OK")
</pallas_src>

<mosaic_0001>
module attributes {stable_mosaic.version = 11 : i64} {
  func.func @_linear_kernel(%arg0: memref<8x768xf32, #tpu.memory_space<vmem>>, %arg1: memref<128x768xf32, #tpu.memory_space<vmem>>, %arg2: memref<1x128xf32, #tpu.memory_space<vmem>>, %arg3: memref<8x128xf32, #tpu.memory_space<vmem>>) attributes {dimension_semantics = [], scalar_prefetch = 0 : i64, scratch_operands = 0 : i64, tpu.core_type = #tpu.core_type<tc>} {
    %c0 = arith.constant 0 : index
    %c0_0 = arith.constant 0 : index
    %0 = vector.load %arg0[%c0, %c0_0] : memref<8x768xf32, #tpu.memory_space<vmem>>, vector<8x768xf32>
    %c0_1 = arith.constant 0 : index
    %c0_2 = arith.constant 0 : index
    %1 = vector.load %arg1[%c0_1, %c0_2] : memref<128x768xf32, #tpu.memory_space<vmem>>, vector<128x768xf32>
    %cst = arith.constant dense<0.000000e+00> : vector<8x128xf32>
    %2 = tpu.matmul %0, %1, %cst {dimension_numbers = #tpu.dot_dimension_numbers<[1], [1], [0], [0], [0, 0, 1, 0], [], []>} : vector<8x768xf32>, vector<128x768xf32>, vector<8x128xf32> -> vector<8x128xf32>
    %c0_3 = arith.constant 0 : index
    %c0_4 = arith.constant 0 : index
    %3 = vector.load %arg2[%c0_3, %c0_4] : memref<1x128xf32, #tpu.memory_space<vmem>>, vector<1x128xf32>
    %4 = vector.broadcast %3 : vector<1x128xf32> to vector<8x128xf32>
    %5 = arith.addf %2, %4 : vector<8x128xf32>
    %c0_5 = arith.constant 0 : index
    %c0_6 = arith.constant 0 : index
    %6 = vector.load %arg3[%c0_5, %c0_6] : memref<8x128xf32, #tpu.memory_space<vmem>>, vector<8x128xf32>
    tpu.vector_store %arg3[%c0_5, %c0_6], %5 {strides = array<i32>} : memref<8x128xf32, #tpu.memory_space<vmem>>, vector<8x128xf32>,
    return
  }
}

</mosaic_0001>

<bundles_post_ra>
// kernel: deep_head_forward.1
= control target key start
LH: loop header
LB: loop body
LE: loop exit
PB: predicated region body
PF: predicated region fallthrough
CT: control target
= control target key end

     0   :  { %8 = vsyncpa [#allocation3], 0  ;;  %s626_s0 = inlined_call_operand.hbm [shape: f32[8,768], index: 0, kind: input, shape index: {}]   ;;  %s627_s1 = inlined_call_operand.hbm [shape: f32[128,768], index: 1, kind: input, shape index: {}]   ;;  %s628_s2 = inlined_call_operand.vmem [shape: f32[1,128], index: 2, kind: input, shape index: {}]   ;;  %s629_s3 = inlined_call_operand.hbm [shape: f32[8,128], index: 3, kind: output, shape index: {}]  }
   0x1   :  { %9 = vsyncpa [#allocation6], 0 }
   0x2   :  { %10 = vsyncpa [#allocation4], 0  ;;  %s555_s12 = smov [#allocation2]   ;;  %s556_s14 = smov [#allocation5]  }
   0x3   :  { %s17_s13 = sshll.u32 %s555_s12, 4  ;;  %s26_s15 = sshll.u32 %s556_s14, 4  ;;  %s18_s13 = int_to_ptr.vmem [resolvable:$true] %s17_s13  ;;  %s580_s15 = int_to_ptr.vmem [resolvable:$true] %s26_s15 }
   0x4   :  { %s483_s18 = scalar_lea.hbm %s626_s0, 768 }
   0x5   :  { %p484_p0 = scmp.ne.s32.totalorder %s626_s0, %s483_s18  ;;  %p487_p1 = scmp.lt.u32.totalorder %s483_s18, %s626_s0 }
   0x7   :  { %p489_p2 = pnand %p487_p1, %p484_p0 }
   0x9   :  { %492 = shalt.err (!%p489_p2)
}
   0xa   :  { %s493_s23 = scalar_lea.vmem %s18_s13, 768  ;;  %p498_p4 = scmp.lt.s32.totalorder %s18_s13, %s18_s13 }
   0xb   :  { %p494_p3 = scmp.ne.s32.totalorder %s18_s13, %s493_s23  ;;  %p499_p5 = scmp.lt.s32.totalorder %s493_s23, %s493_s23 }
   0xd   :  { %p500_p6 = por %p499_p5, %p498_p4 }
   0xf   :  { %p501_p7 = pnand %p500_p6, %p494_p3 }
  0x11   :  { %504 = shalt.err (!%p501_p7)
}
  0x12   :  { %20 = dma.hbm_to_vmem [thread:$0]  %s626_s0, 768, %s18_s13, [#allocation3]  }
  0x13   :  { %s505_s28 = scalar_lea.hbm %s627_s1, 12288 }
  0x14   :  { %p506_p8 = scmp.ne.s32.totalorder %s627_s1, %s505_s28  ;;  %p509_p9 = scmp.lt.u32.totalorder %s505_s28, %s627_s1 }
  0x16   :  { %p511_p10 = pnand %p509_p9, %p506_p8 }
  0x18   :  { %514 = shalt.err (!%p511_p10)
}
  0x19   :  { %s515_s6 = scalar_lea.vmem %s580_s15, 12288  ;;  %p520_p12 = scmp.lt.s32.totalorder %s580_s15, %s580_s15 }
  0x1a   :  { %p516_p11 = scmp.ne.s32.totalorder %s580_s15, %s515_s6  ;;  %p521_p13 = scmp.lt.s32.totalorder %s515_s6, %s515_s6 }
  0x1c   :  { %p522_p0 = por %p521_p13, %p520_p12 }
  0x1e   :  { %p523_p1 = pnand %p522_p0, %p516_p11 }
  0x20   :  { %526 = shalt.err (!%p523_p1)
}
  0x21   :  { %s557_s0 = smov 768   ;;  %s558_s7 = smov 48  }
  0x22   :  { %32 = dma.hbm_to_vmem [thread:$0]  %s627_s1, 12288, %s580_s15, [#allocation6], %s557_s0, %s557_s0, %s558_s7  }
  0x23   :  { %549 = dma.done.wait [#allocation3], 768  }
  0x24   :  { %550 = vsyncadd [#allocation3], 4294966528 }
  0x25   :  { %551 = dma.done.wait [#allocation6], 12288  }
  0x26   :  { %552 = vsyncadd [#allocation6], 4294955008  ;;  %v50_v0 = vld [vmem:[#allocation5 + $0x18] sm:$0xff]  ;;  %v56_v1 = vld [vmem:[#allocation5 + $0x48] sm:$0xff]  ;;  %s559_s11 = smov [#allocation7]  }
  0x27   :  { %v49_v2 = vld [vmem:[#allocation5 + $0x10] sm:$0xff]  ;;  %v410_v3 = vpack.c.bf16 %v56_v1, %v50_v0  ;;  %v55_v4 = vld [vmem:[#allocation5 + $0x40] sm:$0xff]  ;;  %v62_v5 = vld [vmem:[#allocation5 + $0x78] sm:$0xff]  ;;  %s367_s12 = sshll.u32 %s559_s11, 4  ;;  %s368_s12 = int_to_ptr.vmem [resolvable:$true] %s367_s12 }
  0x28   :  { %v68_v6 = vld [vmem:[#allocation5 + $0xa8] sm:$0xff]  ;;  %v412_v7 = vpack.c.bf16 %v55_v4, %v49_v2  ;;  %v61_v9 = vld [vmem:[#allocation5 + $0x70] sm:$0xff]  ;;  %v67_v10 = vld [vmem:[#allocation5 + $0xa0] sm:$0xff]  ;;  %s527_s13 = scalar_lea.vmem %s368_s12, 128  ;;  %p532_p3 = scmp.lt.s32.totalorder %s368_s12, %s368_s12 }
  0x29   :  { %v414_v8 = vpack.c.bf16 %v68_v6, %v62_v5  ;;  %411 = vmatprep.subr.bf16.mxu0 %v410_v3  ;;  %v74_v11 = vld [vmem:[#allocation5 + $0xd8] sm:$0xff]  ;;  %v80_v12 = vld [vmem:[#allocation5 + $0x108] sm:$0xff]  ;;  %v416_v13 = vpack.c.bf16 %v67_v10, %v61_v9  ;;  %v47_v17 = vld [vmem:[#allocation5] sm:$0xff]  ;;  %p528_p2 = scmp.ne.s32.totalorder %s368_s12, %s527_s13  ;;  %p533_p4 = scmp.lt.s32.totalorder %s527_s13, %s527_s13 }
  0x2a   :  { %413 = vmatpush1.bf16.xpose.msra.mxu0 %v412_v7  ;;  %v418_v14 = vpack.c.bf16 %v80_v12, %v74_v11  ;;  %v48_v15 = vld [vmem:[#allocation5 + $0x8] sm:$0xff]  ;;  %v54_v16 = vld [vmem:[#allocation5 + $0x38] sm:$0xff]  ;;  %v53_v18 = vld [vmem:[#allocation5 + $0x30] sm:$0xff] }
  0x2b   :  { %415 = vmatprep.subr.bf16.mxu0 %v414_v8  ;;  %v378_v19 = vpack.c.bf16 %v54_v16, %v48_v15  ;;  %v380_v20 = vpack.c.bf16 %v53_v18, %v47_v17  ;;  %v44_v21 = vld [vmem:[#allocation2 + $0x18] sm:$0xff]  ;;  %v73_v22 = vld [vmem:[#allocation5 + $0xd0] sm:$0xff]  ;;  %v79_v23 = vld [vmem:[#allocation5 + $0x100] sm:$0xff]  ;;  %p534_p5 = por %p533_p4, %p532_p3 }
  0x2c   :  { %v86_v24 = vld [vmem:[#allocation5 + $0x138] sm:$0xff]  ;;  %284 = vmatprep.mubr.f32.mxu0 %v44_v21  ;;  %v92_v25 = vld [vmem:[#allocation5 + $0x168] sm:$0xff]  ;;  %v420_v29 = vpack.c.bf16 %v79_v23, %v73_v22  ;;  %v59_v30 = vld [vmem:[#allocation5 + $0x60] sm:$0xff] }
  0x2d   :  { %379 = vmatprep.subr.bf16.mxu1 %v378_v19  ;;  %v60_v26 = vld [vmem:[#allocation5 + $0x68] sm:$0xff]  ;;  %v66_v27 = vld [vmem:[#allocation5 + $0x98] sm:$0xff]  ;;  %v65_v31 = vld [vmem:[#allocation5 + $0x90] sm:$0xff]  ;;  %v422_v32 = vpack.c.bf16 %v92_v25, %v86_v24  ;;  %p535_p6 = pnand %p534_p5, %p528_p2 }
  0x2e   :  { %381 = vmatpush1.bf16.xpose.msra.mxu1 %v380_v20  ;;  %v382_v28 = vpack.c.bf16 %v66_v27, %v60_v26  ;;  %v72_v33 = vld [vmem:[#allocation5 + $0xc8] sm:$0xff]  ;;  %v78_v34 = vld [vmem:[#allocation5 + $0xf8] sm:$0xff]  ;;  %v384_v35 = vpack.c.bf16 %v65_v31, %v59_v30  ;;  %v85_v37 = vld [vmem:[#allocation5 + $0x130] sm:$0xff] }
  0x2f   :  { %v386_v36 = vpack.c.bf16 %v78_v34, %v72_v33  ;;  %v91_v38 = vld [vmem:[#allocation5 + $0x160] sm:$0xff]  ;;  %v98_v39 = vld [vmem:[#allocation5 + $0x198] sm:$0xff]  ;;  %v104_v40 = vld [vmem:[#allocation5 + $0x1c8] sm:$0xff] }
  0x30   :  { %383 = vmatprep.subr.bf16.mxu1 %v382_v28  ;;  %v424_v41 = vpack.c.bf16 %v91_v38, %v85_v37  ;;  %v71_v42 = vld [vmem:[#allocation5 + $0xc0] sm:$0xff]  ;;  %v77_v43 = vld [vmem:[#allocation5 + $0xf0] sm:$0xff]  ;;  %v426_v44 = vpack.c.bf16 %v104_v40, %v98_v39  ;;  %v84_v45 = vld [vmem:[#allocation5 + $0x128] sm:$0xff] }
  0x31   :  { %v90_v46 = vld [vmem:[#allocation5 + $0x158] sm:$0xff]  ;;  %v388_v47 = vpack.c.bf16 %v77_v43, %v71_v42  ;;  %v97_v49 = vld [vmem:[#allocation5 + $0x190] sm:$0xff]  ;;  %v103_v50 = vld [vmem:[#allocation5 + $0x1c0] sm:$0xff] }
  0x32   :  { %417 = vmatpush1.bf16.xpose.msra.mxu0 %v416_v13  ;;  %v390_v48 = vpack.c.bf16 %v90_v46, %v84_v45  ;;  %v110_v51 = vld [vmem:[#allocation5 + $0x1f8] sm:$0xff]  ;;  %v116_v52 = vld [vmem:[#allocation5 + $0x228] sm:$0xff]  ;;  %v428_v53 = vpack.c.bf16 %v103_v50, %v97_v49  ;;  %v83_v54 = vld [vmem:[#allocation5 + $0x120] sm:$0xff] }
  0x33   :  { %419 = vmatprep.subr.bf16.mxu0 %v418_v14  ;;  %v89_v55 = vld [vmem:[#allocation5 + $0x150] sm:$0xff]  ;;  %v42_v56 = vld [vmem:[#allocation2 + $0x8] sm:$0xff]  ;;  %v430_v57 = vpack.c.bf16 %v116_v52, %v110_v51  ;;  %v96_v58 = vld [vmem:[#allocation5 + $0x188] sm:$0xff] }
  0x34   :  { %v102_v59 = vld [vmem:[#allocation5 + $0x1b8] sm:$0xff]  ;;  %214 = vmatprep.mubr.f32.mxu1 %v42_v56  ;;  %v392_v60 = vpack.c.bf16 %v89_v55, %v83_v54  ;;  %v109_v62 = vld [vmem:[#allocation5 + $0x1f0] sm:$0xff]  ;;  %v115_v63 = vld [vmem:[#allocation5 + $0x220] sm:$0xff] }
  0x35   :  { %v394_v61 = vpack.c.bf16 %v102_v59, %v96_v58  ;;  %v122_v0 = vld [vmem:[#allocation5 + $0x258] sm:$0xff]  ;;  %v128_v1 = vld [vmem:[#allocation5 + $0x288] sm:$0xff]  ;;  %v432_v2 = vpack.c.bf16 %v115_v63, %v109_v62  ;;  %v95_v3 = vld [vmem:[#allocation5 + $0x180] sm:$0xff] }
  0x36   :  { %385 = vmatpush1.bf16.xpose.msra.mxu1 %v384_v35  ;;  %v101_v4 = vld [vmem:[#allocation5 + $0x1b0] sm:$0xff]  ;;  %v434_v5 = vpack.c.bf16 %v128_v1, %v122_v0  ;;  %v108_v6 = vld [vmem:[#allocation5 + $0x1e8] sm:$0xff]  ;;  %v114_v7 = vld [vmem:[#allocation5 + $0x218] sm:$0xff] }
  0x37   :  { %387 = vmatprep.subr.bf16.mxu1 %v386_v36  ;;  %v396_v8 = vpack.c.bf16 %v101_v4, %v95_v3  ;;  %v398_v9 = vpack.c.bf16 %v114_v7, %v108_v6  ;;  %v121_v10 = vld [vmem:[#allocation5 + $0x250] sm:$0xff]  ;;  %v127_v11 = vld [vmem:[#allocation5 + $0x280] sm:$0xff]  ;;  %v134_v12 = vld [vmem:[#allocation5 + $0x2b8] sm:$0xff] }
  0x38   :  { %v140_v13 = vld [vmem:[#allocation5 + $0x2e8] sm:$0xff]  ;;  %v436_v14 = vpack.c.bf16 %v127_v11, %v121_v10  ;;  %v107_v15 = vld [vmem:[#allocation5 + $0x1e0] sm:$0xff]  ;;  %v113_v16 = vld [vmem:[#allocation5 + $0x210] sm:$0xff] }
  0x39   :  { %v438_v17 = vpack.c.bf16 %v140_v13, %v134_v12  ;;  %v120_v18 = vld [vmem:[#allocation5 + $0x248] sm:$0xff]  ;;  %v126_v19 = vld [vmem:[#allocation5 + $0x278] sm:$0xff]  ;;  %v400_v20 = vpack.c.bf16 %v113_v16, %v107_v15  ;;  %v133_v22 = vld [vmem:[#allocation5 + $0x2b0] sm:$0xff] }
  0x3a   :  { %421 = vmatpush1.bf16.xpose.msra.mxu0 %v420_v29  ;;  %v402_v21 = vpack.c.bf16 %v126_v19, %v120_v18  ;;  %v139_v23 = vld [vmem:[#allocation5 + $0x2e0] sm:$0xff]  ;;  %v52_v24 = vld [vmem:[#allocation5 + $0x28] sm:$0xff]  ;;  %v58_v25 = vld [vmem:[#allocation5 + $0x58] sm:$0xff] }
  0x3b   :  { %423 = vmatprep.subr.bf16.mxu0 %v422_v32  ;;  %v440_v26 = vpack.c.bf16 %v139_v23, %v133_v22  ;;  %v119_v27 = vld [vmem:[#allocation5 + $0x240] sm:$0xff]  ;;  %v125_v28 = vld [vmem:[#allocation5 + $0x270] sm:$0xff]  ;;  %v442_v29 = vpack.c.bf16 %v58_v25, %v52_v24  ;;  %v132_v30 = vld [vmem:[#allocation5 + $0x2a8] sm:$0xff] }
  0x3c   :  { %v138_v31 = vld [vmem:[#allocation5 + $0x2d8] sm:$0xff]  ;;  %v404_v32 = vpack.c.bf16 %v125_v28, %v119_v27  ;;  %v51_v34 = vld [vmem:[#allocation5 + $0x20] sm:$0xff]  ;;  %v57_v35 = vld [vmem:[#allocation5 + $0x50] sm:$0xff] }
  0x3d   :  { %v406_v33 = vpack.c.bf16 %v138_v31, %v132_v30  ;;  %v64_v36 = vld [vmem:[#allocation5 + $0x88] sm:$0xff]  ;;  %v70_v37 = vld [vmem:[#allocation5 + $0xb8] sm:$0xff]  ;;  %v43_v38 = vld [vmem:[#allocation2 + $0x10] sm:$0xff]  ;;  %v444_v39 = vpack.c.bf16 %v57_v35, %v51_v34 }
  0x3e   :  { %389 = vmatpush1.bf16.xpose.msra.mxu1 %v388_v47  ;;  %v131_v40 = vld [vmem:[#allocation5 + $0x2a0] sm:$0xff]  ;;  %v446_v42 = vpack.c.bf16 %v70_v37, %v64_v36  ;;  %v46_v43 = vld [vmem:[#allocation2 + $0x28] sm:$0xff]  ;;  %v69_v46 = vld [vmem:[#allocation5 + $0xb0] sm:$0xff] }
  0x3f   :  { %391 = vmatprep.subr.bf16.mxu1 %v390_v48  ;;  %v63_v45 = vld [vmem:[#allocation5 + $0x80] sm:$0xff]  ;;  %v76_v47 = vld [vmem:[#allocation5 + $0xe8] sm:$0xff]  ;;  %v82_v48 = vld [vmem:[#allocation5 + $0x118] sm:$0xff] }
  0x40   :  { %v448_v49 = vpack.c.bf16 %v69_v46, %v63_v45  ;;  %v450_v50 = vpack.c.bf16 %v82_v48, %v76_v47  ;;  %v41_v51 = vld [vmem:[#allocation2] sm:$0xff]  ;;  %v75_v52 = vld [vmem:[#allocation5 + $0xe0] sm:$0xff]  ;;  %v88_v54 = vld [vmem:[#allocation5 + $0x148] sm:$0xff] }
  0x41   :  { %v94_v55 = vld [vmem:[#allocation5 + $0x178] sm:$0xff]  ;;  %v87_v58 = vld [vmem:[#allocation5 + $0x140] sm:$0xff]  ;;  %v93_v59 = vld [vmem:[#allocation5 + $0x170] sm:$0xff] }
  0x42   :  { %425 = vmatpush1.bf16.xpose.msra.mxu0 %v424_v41  ;;  %v137_v41 = vld [vmem:[#allocation5 + $0x2d0] sm:$0xff]  ;;  %v456_v62 = vpack.c.bf16 %v93_v59, %v87_v58  ;;  %v99_v0 = vld [vmem:[#allocation5 + $0x1a0] sm:$0xff]  ;;  %v118_v3 = vld [vmem:[#allocation5 + $0x238] sm:$0xff] }
  0x43   :  { %427 = vmatprep.subr.bf16.mxu0 %v426_v44  ;;  %v408_v44 = vpack.c.bf16 %v137_v41, %v131_v40  ;;  %v105_v1 = vld [vmem:[#allocation5 + $0x1d0] sm:$0xff]  ;;  %v111_v6 = vld [vmem:[#allocation5 + $0x200] sm:$0xff]  ;;  %v142_v15 = vld [vmem:[#allocation5 + $0x2f8] sm:$0xff] }
  0x44   :  { %v460_v4 = vpack.c.bf16 %v105_v1, %v99_v0  ;;  %v117_v7 = vld [vmem:[#allocation5 + $0x230] sm:$0xff]  ;;  %v123_v12 = vld [vmem:[#allocation5 + $0x260] sm:$0xff] }
  0x45   :  { %v464_v10 = vpack.c.bf16 %v117_v7, %v111_v6  ;;  %v129_v13 = vld [vmem:[#allocation5 + $0x290] sm:$0xff]  ;;  %v135_v18 = vld [vmem:[#allocation5 + $0x2c0] sm:$0xff] }
  0x46   :  { %393 = vmatpush1.bf16.xpose.msra.mxu1 %v392_v60  ;;  %v100_v60 = vld [vmem:[#allocation5 + $0x1a8] sm:$0xff]  ;;  %v468_v16 = vpack.c.bf16 %v129_v13, %v123_v12  ;;  %v141_v19 = vld [vmem:[#allocation5 + $0x2f0] sm:$0xff] }
  0x47   :  { %395 = vmatprep.subr.bf16.mxu1 %v394_v61  ;;  %v106_v61 = vld [vmem:[#allocation5 + $0x1d8] sm:$0xff]  ;;  %v377_v24 = vld [vmem:[%s628_s2] ss:$0 sm:$0xff] }
  0x48   :  { %v458_v63 = vpack.c.bf16 %v106_v61, %v100_v60 }
  0x4a   :  { %429 = vmatpush1.bf16.xpose.msra.mxu0 %v428_v53  ;;  %v81_v53 = vld [vmem:[#allocation5 + $0x110] sm:$0xff] }
  0x4b   :  { %431 = vmatprep.subr.bf16.mxu0 %v430_v57  ;;  %v452_v56 = vpack.c.bf16 %v81_v53, %v75_v52  ;;  %v454_v57 = vpack.c.bf16 %v94_v55, %v88_v54 }
  0x4e   :  { %397 = vmatpush1.bf16.xpose.msra.mxu1 %v396_v8  ;;  %v124_v8 = vld [vmem:[#allocation5 + $0x268] sm:$0xff] }
  0x4f   :  { %399 = vmatprep.subr.bf16.mxu1 %v398_v9  ;;  %v130_v9 = vld [vmem:[#allocation5 + $0x298] sm:$0xff] }
  0x50   :  { %v466_v11 = vpack.c.bf16 %v130_v9, %v124_v8 }
  0x52   :  { %433 = vmatpush1.bf16.xpose.msra.mxu0 %v432_v2  ;;  %v112_v2 = vld [vmem:[#allocation5 + $0x208] sm:$0xff] }
  0x53   :  { %435 = vmatprep.subr.bf16.mxu0 %v434_v5  ;;  %v462_v5 = vpack.c.bf16 %v118_v3, %v112_v2 }
  0x56   :  { %401 = vmatpush1.bf16.xpose.msra.mxu1 %v400_v20  ;;  %v472_v20 = vpack.c.bf16 %v141_v19, %v135_v18 }
  0x57   :  { %403 = vmatprep.subr.bf16.mxu1 %v402_v21  ;;  %v45_v21 = vld [vmem:[#allocation2 + $0x20] sm:$0xff] }
  0x5a   :  { %437 = vmatpush1.bf16.xpose.msra.mxu0 %v436_v14  ;;  %v136_v14 = vld [vmem:[#allocation5 + $0x2c8] sm:$0xff] }
  0x5b   :  { %439 = vmatprep.subr.bf16.mxu0 %v438_v17  ;;  %v470_v17 = vpack.c.bf16 %v142_v15, %v136_v14 }
  0x5e   :  { %405 = vmatpush1.bf16.xpose.msra.mxu1 %v404_v32 }
  0x5f   :  { %407 = vmatprep.subr.bf16.mxu1 %v406_v33 }
  0x62   :  { %441 = vmatpush1.bf16.xpose.msra.mxu0 %v440_v26 }
  0x63   :  { %443 = vmatprep.subr.bf16.mxu0 %v442_v29 }
  0x66   :  { %409 = vmatpush1.bf16.xpose.msra.mxu1 %v408_v44 }
  0x69   :  { %285 = vmatmul.mubr.f32.vlgmr.msra.gmra.mrb[0].mxu0 %v43_v38 }
  0x6a   :  { %445 = vmatpush1.bf16.xpose.msra.mxu0 %v444_v39  ;;  %354 = vmatprep.mubr.f32.mxu0 %v46_v43 }
  0x6b   :  { %447 = vmatprep.subr.bf16.mxu0 %v446_v42 }
  0x6d   :  { %215 = vmatmul.mubr.f32.vlgmr.msra.gmra.mrb[0].mxu1 %v41_v51 }
  0x72   :  { %449 = vmatpush1.bf16.xpose.msra.mxu0 %v448_v49 }
  0x73   :  { %451 = vmatprep.subr.bf16.mxu0 %v450_v50 }
  0x7a   :  { %453 = vmatpush1.bf16.xpose.msra.mxu0 %v452_v56 }
  0x7b   :  { %455 = vmatprep.subr.bf16.mxu0 %v454_v57 }
  0x82   :  { %457 = vmatpush1.bf16.xpose.msra.mxu0 %v456_v62 }
  0x83   :  { %459 = vmatprep.subr.bf16.mxu0 %v458_v63 }
  0x8a   :  { %461 = vmatpush1.bf16.xpose.msra.mxu0 %v460_v4 }
  0x8b   :  { %463 = vmatprep.subr.bf16.mxu0 %v462_v5 }
  0x92   :  { %465 = vmatpush1.bf16.xpose.msra.mxu0 %v464_v10 }
  0x93   :  { %467 = vmatprep.subr.bf16.mxu0 %v466_v11 }
  0x9a   :  { %469 = vmatpush1.bf16.xpose.msra.mxu0 %v468_v16 }
  0x9b   :  { %471 = vmatprep.subr.bf16.mxu0 %v470_v17 }
  0xa2   :  { %473 = vmatpush1.bf16.xpose.msra.mxu0 %v472_v20 }
  0xa9   :  { %355 = vmatmul.mubr.f32.vlgmr.msra.gmra.mrb[0].mxu0 %v45_v21 }
 0x140   :  { %v216_v22 = vpop.f32.mrb[0].mxu1 }
 0x141   :  { %v218_v23 = vpop.f32.mrb[1].mxu1  ;;  %v217_v25 = vadd.f32 %v377_v24, %v216_v22 }
 0x17c   :  { %v356_v26 = vpop.f32.mrb[0].mxu0 }
 0x17d   :  { %v475_v27 = vadd.f32 %v356_v26, %v217_v25  ;;  %v358_v28 = vpop.f32.mrb[1].mxu0 }
 0x17f   :  { %360 = vst [vmem:[#allocation7] sm:$0xff] %v475_v27 }
 0x180   :  { %538 = shalt.err (!%p535_p6)
}
 0x181   :  { %s539_s16 = scalar_lea.hbm %s629_s3, 128 }
 0x182   :  { %p540_p7 = scmp.ne.s32.totalorder %s629_s3, %s539_s16  ;;  %p543_p8 = scmp.lt.u32.totalorder %s539_s16, %s629_s3 }
 0x184   :  { %p545_p9 = pnand %p543_p8, %p540_p7 }
 0x186   :  { %548 = shalt.err (!%p545_p9)
}
 0x187   :  { %370 = dma.vmem_to_hbm [thread:$0]  %s368_s12, 128, %s629_s3, [#allocation4]  }
 0x188   :  { %553 = dma.done.wait [#allocation4], 128  }
 0x189   :  { %554 = vsyncadd [#allocation4], 4294967168 }
 0x18a   :  { %374 = vsyncpa [#allocation3], 1 }
 0x18b   :  { %375 = vsyncpa [#allocation6], 1 }
 0x18c   :  { %376 = vsyncpa [#allocation4], 1 }

</bundles_post_ra>
